<compile_context>
chip_gen: v5e
topology: v5e:2x2
jax: 0.10.0
libtpu: 0.0.40
codegen_flags: <defaults>
</compile_context>

<pallas_src>
import functools

import jax
import jax.numpy as jnp
from jax.experimental import pallas as pl
from jax.experimental.pallas import tpu as pltpu

BETA = 0.25          # commitment cost of the reference VectorQuantizer
_LANE = 128
_SUBLANE = 8
_DEFAULT_TILE_N = 1024   # ~0.5 MiB of (TILE_N,128) f32 temporaries; safe on v5e/v6e/v7x
_PAD_DIST = 1e30         # distance assigned to padded codewords (never argmin)


def _round_up(a, b):
  return ((a + b - 1) // b) * b


def _rvq_kernel(x_ref, cb_ref, csq_ref, xq_ref, loss_ref, idx_ref, *,
                num_steps, n_e_pad, tile_n, n_valid, use_bf16_matmul):
  """One token tile; the whole residual-quantization loop runs in-kernel.

  x_ref   : (tile_n, D)          f32   input latents (tile)
  cb_ref  : (Q, n_e_pad, D)      f32   stacked codebooks (resident across tiles)
  csq_ref : (Q, n_e_pad)         f32   precomputed ||codeword||^2 (+inf for pads)
  xq_ref  : (tile_n, D)          f32   quantized output (tile)
  loss_ref: (1, 8, 128)          f32   per-tile partial sum of squared errors
  idx_ref : (Q, tile_n)          i32   code indices (lane-dense along tokens)
  """
  residual = x_ref[...].astype(jnp.float32)                    # (tile_n, D)
  x_q = jnp.zeros_like(residual)
  sq_acc = jnp.zeros_like(residual)                            # per-element SSE accumulator

  # Loop-invariant lane index, hoisted out of the per-quantizer loop.
  lane_ids = jax.lax.broadcasted_iota(jnp.int32, (tile_n, n_e_pad), 1)

  # Mask rows past the true token count (only when the grid is ragged).
  ragged = (n_valid % tile_n) != 0
  if ragged:
    row_gid = (pl.program_id(0) * tile_n
               + jax.lax.broadcasted_iota(jnp.int32, (tile_n, 1), 0))
    valid = (row_gid < n_valid).astype(jnp.float32)             # (tile_n, 1)

  for q in range(num_steps):                                    # static unroll, Q small
    cb = cb_ref[q]                                              # (n_e_pad, D)
    c_sq = csq_ref[pl.ds(q, 1), :]                              # (1, n_e_pad)

    if use_bf16_matmul:
      # v6e/v7x option: bf16 operands for the distance matmul (may flip
      # argmin on exact ties vs the f32 reference, so off by default).
      r_mm = residual.astype(jnp.bfloat16)
      cb_mm = cb.astype(jnp.bfloat16)
    else:
      r_mm, cb_mm = residual, cb

    # d = ||c||^2 - 2 r.c ; the per-row ||r||^2 term is argmin-invariant.
    cross = jax.lax.dot_general(r_mm, cb_mm, (((1,), (1,)), ((), ())),
                                preferred_element_type=jnp.float32)
    d = c_sq - 2.0 * cross                                      # (tile_n, n_e_pad)

    # argmin with first-occurrence tie breaking (matches torch.argmin).
    min_d = jnp.min(d, axis=-1, keepdims=True)
    idx = jnp.min(jnp.where(d <= min_d, lane_ids, n_e_pad), axis=-1)   # (tile_n,) i32
    idx_ref[q, :] = idx

    # Codebook gather as a one-hot matmul on the MXU (exact in f32).
    one_hot = (lane_ids == idx[:, None]).astype(jnp.float32)    # (tile_n, n_e_pad)
    x_res = jnp.dot(one_hot, cb, preferred_element_type=jnp.float32)   # (tile_n, D)

    # Per-element squared error; a single cross-lane reduce happens after the
    # loop (the (1+beta)/(Q*N*D) normalization happens in the wrapper).
    diff = x_res - residual
    sq_acc = sq_acc + diff * diff

    residual = residual - x_res
    x_q = x_q + x_res

  if ragged:
    sq_acc = sq_acc * valid
  loss_sum = jnp.sum(sq_acc)                                    # one XLU reduce per tile

  xq_ref[...] = x_q.astype(xq_ref.dtype)
  loss_ref[...] = jnp.full(loss_ref.shape, loss_sum, dtype=jnp.float32)


def residual_vq_forward(x, codebooks, *, beta=BETA, tile_n=_DEFAULT_TILE_N,
                        use_bf16_matmul=False):
  """x: (N, e_dim), codebooks: (Q, n_e, e_dim).

  Returns (x_q (N, e_dim), mean_loss scalar, indices (N, Q) int32).
  """
  n_tokens, e_dim = x.shape
  num_steps, n_e, cb_dim = codebooks.shape
  assert cb_dim == e_dim

  # Lane-dense codeword axis (pad to a multiple of 128).
  n_e_pad = _round_up(max(n_e, _LANE), _LANE)

  # Token tiling: one full-array tile for small N, else multiple-of-128 tiles.
  if n_tokens <= tile_n:
    tile = _round_up(n_tokens, _SUBLANE)
  else:
    tile = _round_up(tile_n, _LANE)
  num_tiles = -(-n_tokens // tile)
  n_padded = num_tiles * tile

  # Pad / precompute once in plain XLA (outside the kernel).
  x_in = x if n_padded == n_tokens else jnp.pad(x, ((0, n_padded - n_tokens), (0, 0)))
  cb_f32 = codebooks.astype(jnp.float32)
  cb_pad = jnp.zeros((num_steps, n_e_pad, e_dim), jnp.float32).at[:, :n_e, :].set(cb_f32)
  c_sq = jnp.sum(cb_f32 * cb_f32, axis=-1)                           # (Q, n_e)
  c_sq_pad = jnp.full((num_steps, n_e_pad), _PAD_DIST, jnp.float32).at[:, :n_e].set(c_sq)

  kernel = functools.partial(
      _rvq_kernel, num_steps=num_steps, n_e_pad=n_e_pad, tile_n=tile,
      n_valid=n_tokens, use_bf16_matmul=use_bf16_matmul)

  flops = int(num_steps) * int(n_padded) * 4 * int(e_dim) * int(n_e_pad)  # cross + gather
  bytes_accessed = int(n_padded * e_dim * 4 * 2                       # x in, x_q out
                       + num_steps * n_e_pad * (e_dim + 1) * 4        # codebooks + norms
                       + num_steps * n_padded * 4                     # indices
                       + num_tiles * _SUBLANE * _LANE * 4)            # loss partials

  x_q, loss_part, idx = pl.pallas_call(
      kernel,
      grid=(num_tiles,),
      in_specs=[
          pl.BlockSpec((tile, e_dim), lambda i: (i, 0)),
          pl.BlockSpec((num_steps, n_e_pad, e_dim), lambda i: (0, 0, 0)),
          pl.BlockSpec((num_steps, n_e_pad), lambda i: (0, 0)),
      ],
      out_specs=(
          pl.BlockSpec((tile, e_dim), lambda i: (i, 0)),
          pl.BlockSpec((1, _SUBLANE, _LANE), lambda i: (i, 0, 0)),
          pl.BlockSpec((num_steps, tile), lambda i: (0, i)),
      ),
      out_shape=(
          jax.ShapeDtypeStruct((n_padded, e_dim), x.dtype),
          jax.ShapeDtypeStruct((num_tiles, _SUBLANE, _LANE), jnp.float32),
          jax.ShapeDtypeStruct((num_steps, n_padded), jnp.int32),
      ),
      compiler_params=pltpu.CompilerParams(dimension_semantics=("parallel",)),
      cost_estimate=pl.CostEstimate(flops=flops, transcendentals=0,
                                    bytes_accessed=bytes_accessed),
  )(x_in, cb_pad, c_sq_pad)

  mean_loss = (1.0 + beta) * jnp.sum(loss_part[:, 0, 0]) / (num_steps * n_tokens * e_dim)
  # torch stacks per-quantizer indices on the last dim -> (N, Q)
  return x_q[:n_tokens], mean_loss, idx[:, :n_tokens].T


def make_rvq_params(key, n_e_list, e_dim, code_length):
  """Deterministic codebook init (stand-in for nn.Embedding weights).

  If num_quantizers == 1 the PyTorch module reuses the single quantizer
  `code_length` times -> replicate its codebook along the step axis.
  """
  n_e = n_e_list[0]
  assert all(n == n_e for n in n_e_list), "kernel stacks codebooks: equal n_e required"
  num_q = len(n_e_list)
  cb = jax.random.uniform(key, (num_q, n_e, e_dim), jnp.float32,
                          minval=-1.0 / n_e, maxval=1.0 / n_e)
  if num_q == 1:
    cb = jnp.tile(cb, (code_length, 1, 1))
  return cb


def _reference_forward(x, codebooks, beta=BETA):
  """Pure-JAX reference mirroring the PyTorch forward (for verification)."""
  residual = x
  x_q = jnp.zeros_like(x)
  losses, indices = [], []
  for q in range(codebooks.shape[0]):
    cb = codebooks[q]
    d = (jnp.sum(residual**2, -1, keepdims=True) + jnp.sum(cb**2, -1)
         - 2.0 * residual @ cb.T)
    idx = jnp.argmin(d, axis=-1).astype(jnp.int32)
    x_res = cb[idx]
    losses.append((1.0 + beta) * jnp.mean((x_res - residual) ** 2))
    residual = residual - x_res
    x_q = x_q + x_res
    indices.append(idx)
  return x_q, jnp.mean(jnp.stack(losses)), jnp.stack(indices, axis=-1)


if __name__ == "__main__":
  # Module config: 3 quantizers, codebook size 64, embedding dim 32.
  n_e_list = [64, 64, 64]
  e_dim = 32
  code_length = 3

  key = jax.random.PRNGKey(0)
  k_x, k_cb, k_x2 = jax.random.split(key, 3)
  codebooks = make_rvq_params(k_cb, n_e_list, e_dim, code_length)

  # Small single-tile case (matches the module's flat-latent usage).
  n_tokens = 8
  x = jax.random.normal(k_x, (n_tokens, e_dim), jnp.float32)
  x_q, mean_loss, all_indices = residual_vq_forward(x, codebooks)
  jax.block_until_ready((x_q, mean_loss, all_indices))

  x_q_r, loss_r, idx_r = _reference_forward(x, codebooks)
  assert jnp.allclose(x_q, x_q_r, atol=1e-4, rtol=1e-4), "x_q mismatch"
  assert jnp.allclose(mean_loss, loss_r, atol=1e-4, rtol=1e-4), "loss mismatch"
  assert jnp.array_equal(all_indices, idx_r), "indices mismatch"
  assert x_q.shape == (n_tokens, e_dim)
  assert all_indices.shape == (n_tokens, len(n_e_list))

  # Multi-tile + ragged-last-tile case (exercises the parallel grid and the
  # masked per-tile loss partials).
  n_tokens2 = 2500
  x2 = jax.random.normal(k_x2, (n_tokens2, e_dim), jnp.float32)
  x_q2, loss2, idx2 = residual_vq_forward(x2, codebooks, tile_n=1024)
  jax.block_until_ready((x_q2, loss2, idx2))

  x_q2_r, loss2_r, idx2_r = _reference_forward(x2, codebooks)
  assert jnp.allclose(x_q2, x_q2_r, atol=1e-4, rtol=1e-4), "tiled x_q mismatch"
  assert jnp.allclose(loss2, loss2_r, atol=1e-4, rtol=1e-4), "tiled loss mismatch"
  assert jnp.array_equal(idx2, idx2_r), "tiled indices mismatch"

  print("KERNEL_OK")
</pallas_src>

<mosaic_0001>
module attributes {stable_mosaic.version = 11 : i64} {
  func.func @_rvq_kernel(%arg0: i32, %arg1: memref<8x32xf32, #tpu.memory_space<vmem>>, %arg2: memref<3x128x32xf32, #tpu.memory_space<vmem>>, %arg3: memref<3x128xf32, #tpu.memory_space<vmem>>, %arg4: memref<8x32xf32, #tpu.memory_space<vmem>>, %arg5: memref<1x8x128xf32, #tpu.memory_space<vmem>>, %arg6: memref<3x8xi32, #tpu.memory_space<vmem>>) attributes {dimension_semantics = [#tpu.dimension_semantics<parallel>], iteration_bounds = array<i64: 1>, scalar_prefetch = 0 : i64, scratch_operands = 0 : i64, tpu.core_type = #tpu.core_type<tc>, window_params = [{transform_indices = @transform_0, window_bounds = array<i64: 8, 32>}, {pipeline_mode = #tpu.pipeline_mode<synchronous>, transform_indices = @transform_1, window_bounds = array<i64: 3, 128, 32>}, {pipeline_mode = #tpu.pipeline_mode<synchronous>, transform_indices = @transform_2, window_bounds = array<i64: 3, 128>}, {transform_indices = @transform_3, window_bounds = array<i64: 8, 32>}, {transform_indices = @transform_4, window_bounds = array<i64: 1, 8, 128>}, {transform_indices = @transform_5, window_bounds = array<i64: 3, 8>}]} {
    %c0 = arith.constant 0 : index
    %c0_0 = arith.constant 0 : index
    %0 = vector.load %arg1[%c0, %c0_0] : memref<8x32xf32, #tpu.memory_space<vmem>>, vector<8x32xf32>
    %cst = arith.constant 0.000000e+00 : f32
    %1 = vector.broadcast %cst : f32 to vector<8x32xf32>
    %cst_1 = arith.constant 0.000000e+00 : f32
    %2 = vector.broadcast %cst_1 : f32 to vector<8x32xf32>
    %3 = tpu.iota {dimensions = array<i32: 1>} : vector<8x128xi32>
    %c0_2 = arith.constant 0 : index
    %c0_3 = arith.constant 0 : index
    %c0_4 = arith.constant 0 : index
    %4 = vector.load %arg2[%c0_2, %c0_3, %c0_4] : memref<3x128x32xf32, #tpu.memory_space<vmem>>, vector<1x128x32xf32>
    %5 = vector.shape_cast %4 : vector<1x128x32xf32> to vector<128x32xf32>
    %c0_5 = arith.constant 0 : index
    %c0_6 = arith.constant 0 : index
    %6 = vector.load %arg3[%c0_5, %c0_6] : memref<3x128xf32, #tpu.memory_space<vmem>>, vector<1x128xf32>
    %cst_7 = arith.constant dense<0.000000e+00> : vector<8x128xf32>
    %7 = tpu.matmul %0, %5, %cst_7 {dimension_numbers = #tpu.dot_dimension_numbers<[1], [1], [0], [0], [0, 0, 1, 0], [], []>} : vector<8x32xf32>, vector<128x32xf32>, vector<8x128xf32> -> vector<8x128xf32>
    %cst_8 = arith.constant 2.000000e+00 : f32
    %8 = vector.broadcast %cst_8 : f32 to vector<8x128xf32>
    %9 = arith.mulf %8, %7 : vector<8x128xf32>
    %10 = vector.broadcast %6 : vector<1x128xf32> to vector<8x128xf32>
    %11 = arith.subf %10, %9 : vector<8x128xf32>
    %cst_9 = arith.constant dense<0x7F800000> : vector<8xf32>
    %12 = vector.multi_reduction <minimumf>, %11, %cst_9 [1] : vector<8x128xf32> to vector<8xf32>
    %13 = vector.shape_cast %12 : vector<8xf32> to vector<8x1xf32>
    %14 = vector.broadcast %13 : vector<8x1xf32> to vector<8x128xf32>
    %15 = arith.cmpf ole, %11, %14 : vector<8x128xf32>
    %c128_i32 = arith.constant 128 : i32
    %16 = vector.broadcast %c128_i32 : i32 to vector<8x128xi32>
    %17 = arith.select %15, %3, %16 : vector<8x128xi1>, vector<8x128xi32>
    %cst_10 = arith.constant dense<2147483647> : vector<8xi32>
    %18 = vector.multi_reduction <minsi>, %17, %cst_10 [1] : vector<8x128xi32> to vector<8xi32>
    %c0_11 = arith.constant 0 : index
    %c0_12 = arith.constant 0 : index
    %19 = vector.load %arg6[%c0_11, %c0_12] : memref<3x8xi32, #tpu.memory_space<vmem>>, vector<1x8xi32>
    %20 = vector.shape_cast %19 : vector<1x8xi32> to vector<8xi32>
    %21 = vector.shape_cast %18 : vector<8xi32> to vector<1x8xi32>
    tpu.vector_store %arg6[%c0_11, %c0_12], %21 {strides = array<i32>} : memref<3x8xi32, #tpu.memory_space<vmem>>, vector<1x8xi32>,
    %22 = vector.shape_cast %18 : vector<8xi32> to vector<8x1xi32>
    %23 = vector.broadcast %22 : vector<8x1xi32> to vector<8x128xi32>
    %24 = arith.cmpi eq, %3, %23 : vector<8x128xi32>
    %25 = arith.extui %24 : vector<8x128xi1> to vector<8x128xi32>
    %26 = arith.sitofp %25 : vector<8x128xi32> to vector<8x128xf32>
    %cst_13 = arith.constant dense<0.000000e+00> : vector<8x32xf32>
    %27 = tpu.matmul %26, %5, %cst_13 {dimension_numbers = #tpu.dot_dimension_numbers<[1], [0], [0], [1], [0, 0, 1, 1], [], []>} : vector<8x128xf32>, vector<128x32xf32>, vector<8x32xf32> -> vector<8x32xf32>
    %28 = arith.subf %27, %0 : vector<8x32xf32>
    %29 = arith.mulf %28, %28 : vector<8x32xf32>
    %30 = arith.addf %2, %29 : vector<8x32xf32>
    %31 = arith.subf %0, %27 : vector<8x32xf32>
    %32 = arith.addf %1, %27 : vector<8x32xf32>
    %c1 = arith.constant 1 : index
    %c0_14 = arith.constant 0 : index
    %c0_15 = arith.constant 0 : index
    %33 = vector.load %arg2[%c1, %c0_14, %c0_15] : memref<3x128x32xf32, #tpu.memory_space<vmem>>, vector<1x128x32xf32>
    %34 = vector.shape_cast %33 : vector<1x128x32xf32> to vector<128x32xf32>
    %c1_16 = arith.constant 1 : index
    %c0_17 = arith.constant 0 : index
    %35 = vector.load %arg3[%c1_16, %c0_17] : memref<3x128xf32, #tpu.memory_space<vmem>>, vector<1x128xf32>
    %cst_18 = arith.constant dense<0.000000e+00> : vector<8x128xf32>
    %36 = tpu.matmul %31, %34, %cst_18 {dimension_numbers = #tpu.dot_dimension_numbers<[1], [1], [0], [0], [0, 0, 1, 0], [], []>} : vector<8x32xf32>, vector<128x32xf32>, vector<8x128xf32> -> vector<8x128xf32>
    %cst_19 = arith.constant 2.000000e+00 : f32
    %37 = vector.broadcast %cst_19 : f32 to vector<8x128xf32>
    %38 = arith.mulf %37, %36 : vector<8x128xf32>
    %39 = vector.broadcast %35 : vector<1x128xf32> to vector<8x128xf32>
    %40 = arith.subf %39, %38 : vector<8x128xf32>
    %cst_20 = arith.constant dense<0x7F800000> : vector<8xf32>
    %41 = vector.multi_reduction <minimumf>, %40, %cst_20 [1] : vector<8x128xf32> to vector<8xf32>
    %42 = vector.shape_cast %41 : vector<8xf32> to vector<8x1xf32>
    %43 = vector.broadcast %42 : vector<8x1xf32> to vector<8x128xf32>
    %44 = arith.cmpf ole, %40, %43 : vector<8x128xf32>
    %c128_i32_21 = arith.constant 128 : i32
    %45 = vector.broadcast %c128_i32_21 : i32 to vector<8x128xi32>
    %46 = arith.select %44, %3, %45 : vector<8x128xi1>, vector<8x128xi32>
    %cst_22 = arith.constant dense<2147483647> : vector<8xi32>
    %47 = vector.multi_reduction <minsi>, %46, %cst_22 [1] : vector<8x128xi32> to vector<8xi32>
    %c1_23 = arith.constant 1 : index
    %c0_24 = arith.constant 0 : index
    %48 = vector.load %arg6[%c1_23, %c0_24] : memref<3x8xi32, #tpu.memory_space<vmem>>, vector<1x8xi32>
    %49 = vector.shape_cast %48 : vector<1x8xi32> to vector<8xi32>
    %50 = vector.shape_cast %47 : vector<8xi32> to vector<1x8xi32>
    tpu.vector_store %arg6[%c1_23, %c0_24], %50 {strides = array<i32>} : memref<3x8xi32, #tpu.memory_space<vmem>>, vector<1x8xi32>,
    %51 = vector.shape_cast %47 : vector<8xi32> to vector<8x1xi32>
    %52 = vector.broadcast %51 : vector<8x1xi32> to vector<8x128xi32>
    %53 = arith.cmpi eq, %3, %52 : vector<8x128xi32>
    %54 = arith.extui %53 : vector<8x128xi1> to vector<8x128xi32>
    %55 = arith.sitofp %54 : vector<8x128xi32> to vector<8x128xf32>
    %cst_25 = arith.constant dense<0.000000e+00> : vector<8x32xf32>
    %56 = tpu.matmul %55, %34, %cst_25 {dimension_numbers = #tpu.dot_dimension_numbers<[1], [0], [0], [1], [0, 0, 1, 1], [], []>} : vector<8x128xf32>, vector<128x32xf32>, vector<8x32xf32> -> vector<8x32xf32>
    %57 = arith.subf %56, %31 : vector<8x32xf32>
    %58 = arith.mulf %57, %57 : vector<8x32xf32>
    %59 = arith.addf %30, %58 : vector<8x32xf32>
    %60 = arith.subf %31, %56 : vector<8x32xf32>
    %61 = arith.addf %32, %56 : vector<8x32xf32>
    %c2 = arith.constant 2 : index
    %c0_26 = arith.constant 0 : index
    %c0_27 = arith.constant 0 : index
    %62 = vector.load %arg2[%c2, %c0_26, %c0_27] : memref<3x128x32xf32, #tpu.memory_space<vmem>>, vector<1x128x32xf32>
    %63 = vector.shape_cast %62 : vector<1x128x32xf32> to vector<128x32xf32>
    %c2_28 = arith.constant 2 : index
    %c0_29 = arith.constant 0 : index
    %64 = vector.load %arg3[%c2_28, %c0_29] : memref<3x128xf32, #tpu.memory_space<vmem>>, vector<1x128xf32>
    %cst_30 = arith.constant dense<0.000000e+00> : vector<8x128xf32>
    %65 = tpu.matmul %60, %63, %cst_30 {dimension_numbers = #tpu.dot_dimension_numbers<[1], [1], [0], [0], [0, 0, 1, 0], [], []>} : vector<8x32xf32>, vector<128x32xf32>, vector<8x128xf32> -> vector<8x128xf32>
    %cst_31 = arith.constant 2.000000e+00 : f32
    %66 = vector.broadcast %cst_31 : f32 to vector<8x128xf32>
    %67 = arith.mulf %66, %65 : vector<8x128xf32>
    %68 = vector.broadcast %64 : vector<1x128xf32> to vector<8x128xf32>
    %69 = arith.subf %68, %67 : vector<8x128xf32>
    %cst_32 = arith.constant dense<0x7F800000> : vector<8xf32>
    %70 = vector.multi_reduction <minimumf>, %69, %cst_32 [1] : vector<8x128xf32> to vector<8xf32>
    %71 = vector.shape_cast %70 : vector<8xf32> to vector<8x1xf32>
    %72 = vector.broadcast %71 : vector<8x1xf32> to vector<8x128xf32>
    %73 = arith.cmpf ole, %69, %72 : vector<8x128xf32>
    %c128_i32_33 = arith.constant 128 : i32
    %74 = vector.broadcast %c128_i32_33 : i32 to vector<8x128xi32>
    %75 = arith.select %73, %3, %74 : vector<8x128xi1>, vector<8x128xi32>
    %cst_34 = arith.constant dense<2147483647> : vector<8xi32>
    %76 = vector.multi_reduction <minsi>, %75, %cst_34 [1] : vector<8x128xi32> to vector<8xi32>
    %c2_35 = arith.constant 2 : index
    %c0_36 = arith.constant 0 : index
    %77 = vector.load %arg6[%c2_35, %c0_36] : memref<3x8xi32, #tpu.memory_space<vmem>>, vector<1x8xi32>
    %78 = vector.shape_cast %77 : vector<1x8xi32> to vector<8xi32>
    %79 = vector.shape_cast %76 : vector<8xi32> to vector<1x8xi32>
    tpu.vector_store %arg6[%c2_35, %c0_36], %79 {strides = array<i32>} : memref<3x8xi32, #tpu.memory_space<vmem>>, vector<1x8xi32>,
    %80 = vector.shape_cast %76 : vector<8xi32> to vector<8x1xi32>
    %81 = vector.broadcast %80 : vector<8x1xi32> to vector<8x128xi32>
    %82 = arith.cmpi eq, %3, %81 : vector<8x128xi32>
    %83 = arith.extui %82 : vector<8x128xi1> to vector<8x128xi32>
    %84 = arith.sitofp %83 : vector<8x128xi32> to vector<8x128xf32>
    %cst_37 = arith.constant dense<0.000000e+00> : vector<8x32xf32>
    %85 = tpu.matmul %84, %63, %cst_37 {dimension_numbers = #tpu.dot_dimension_numbers<[1], [0], [0], [1], [0, 0, 1, 1], [], []>} : vector<8x128xf32>, vector<128x32xf32>, vector<8x32xf32> -> vector<8x32xf32>
    %86 = arith.subf %85, %60 : vector<8x32xf32>
    %87 = arith.mulf %86, %86 : vector<8x32xf32>
    %88 = arith.addf %59, %87 : vector<8x32xf32>
    %89 = arith.addf %61, %85 : vector<8x32xf32>
    %90 = vector.shape_cast %88 : vector<8x32xf32> to vector<1x8x32xf32>
    %cst_38 = arith.constant dense<0.000000e+00> : vector<1xf32>
    %91 = vector.multi_reduction <add>, %90, %cst_38 [1, 2] : vector<1x8x32xf32> to vector<1xf32>
    %92 = vector.shape_cast %91 : vector<1xf32> to vector<1x1x1xf32>
    %93 = vector.extract %92[0, 0, 0] : f32 from vector<1x1x1xf32>
    %c0_39 = arith.constant 0 : index
    %c0_40 = arith.constant 0 : index
    %94 = vector.load %arg4[%c0_39, %c0_40] : memref<8x32xf32, #tpu.memory_space<vmem>>, vector<8x32xf32>
    tpu.vector_store %arg4[%c0_39, %c0_40], %89 {strides = array<i32>} : memref<8x32xf32, #tpu.memory_space<vmem>>, vector<8x32xf32>,
    %95 = vector.broadcast %93 : f32 to vector<1x8x128xf32>
    %c0_41 = arith.constant 0 : index
    %c0_42 = arith.constant 0 : index
    %c0_43 = arith.constant 0 : index
    %96 = vector.load %arg5[%c0_41, %c0_42, %c0_43] : memref<1x8x128xf32, #tpu.memory_space<vmem>>, vector<1x8x128xf32>
    tpu.vector_store %arg5[%c0_41, %c0_42, %c0_43], %95 {strides = array<i32>} : memref<1x8x128xf32, #tpu.memory_space<vmem>>, vector<1x8x128xf32>,
    return
  }
  func.func @transform_0(%arg0: i32) -> (i32, i32) {
    %c0_i32 = arith.constant 0 : i32
    %c0_i32_0 = arith.constant 0 : i32
    return %arg0, %c0_i32 : i32, i32
  }
  func.func @transform_1(%arg0: i32) -> (i32, i32, i32) {
    %c0_i32 = arith.constant 0 : i32
    %c0_i32_0 = arith.constant 0 : i32
    %c0_i32_1 = arith.constant 0 : i32
    %c0_i32_2 = arith.constant 0 : i32
    return %c0_i32, %c0_i32_0, %c0_i32_1 : i32, i32, i32
  }
  func.func @transform_2(%arg0: i32) -> (i32, i32) {
    %c0_i32 = arith.constant 0 : i32
    %c0_i32_0 = arith.constant 0 : i32
    %c0_i32_1 = arith.constant 0 : i32
    return %c0_i32, %c0_i32_0 : i32, i32
  }
  func.func @transform_3(%arg0: i32) -> (i32, i32) {
    %c0_i32 = arith.constant 0 : i32
    %c0_i32_0 = arith.constant 0 : i32
    return %arg0, %c0_i32 : i32, i32
  }
  func.func @transform_4(%arg0: i32) -> (i32, i32, i32) {
    %c0_i32 = arith.constant 0 : i32
    %c0_i32_0 = arith.constant 0 : i32
    %c0_i32_1 = arith.constant 0 : i32
    return %arg0, %c0_i32, %c0_i32_0 : i32, i32, i32
  }
  func.func @transform_5(%arg0: i32) -> (i32, i32) {
    %c0_i32 = arith.constant 0 : i32
    %c0_i32_0 = arith.constant 0 : i32
    return %c0_i32, %arg0 : i32, i32
  }
}

</mosaic_0001>

<bundles_post_ra>
// kernel: tpu_custom_call.1
= control target key start
LH: loop header
LB: loop body
LE: loop exit
PB: predicated region body
PF: predicated region fallthrough
CT: control target
= control target key end

     0   :  { %11 = vsyncpa [#allocation3], 0  ;;  %vm39_vm0 = vcmask 261120   ;;  %s960_s0 = inlined_call_operand.vmem [shape: f32[8,32], index: 0, kind: input, shape index: {}]   ;;  %s961_s1 = inlined_call_operand.vmem [shape: f32[3,128,32], index: 1, kind: input, shape index: {}]   ;;  %s962_s2 = inlined_call_operand.vmem [shape: f32[3,128], index: 2, kind: input, shape index: {}]   ;;  %s963_s3 = inlined_call_operand.hbm [shape: f32[8,32], index: 3, kind: output, shape index: {0}]   ;;  %s964_s4 = inlined_call_operand.hbm [shape: f32[1,8,128], index: 4, kind: output, shape index: {1}]   ;;  %s965_s5 = inlined_call_operand.hbm [shape: s32[3,8], index: 5, kind: output, shape index: {2}]  }
   0x1   :  { %v37_v0 = vld [vmem:[%s961_s1 + $0x78] sm:$0xff]  ;;  %v36_v1 = vld [vmem:[%s961_s1 + $0x70] sm:$0xff]  ;;  %v35_v2 = vld [vmem:[%s961_s1 + $0x68] sm:$0xff] }
   0x2   :  { %502 = vmatpush.xpose.msk.msra.mxu0 %vm39_vm0, %v37_v0  ;;  %138 = vmatpush.msra.mxu1 %v37_v0 }
   0x4   :  { %139 = vmatpush.msra.mxu1 %v36_v1 }
   0x5   :  { %12 = vsyncpa [#allocation5], 0  ;;  %v34_v3 = vld [vmem:[%s961_s1 + $0x60] sm:$0xff]  ;;  %v33_v4 = vld [vmem:[%s961_s1 + $0x58] sm:$0xff]  ;;  %v20_v21 = vlaneseq  ;;  %vm133_vm3 = vcmask 57344   ;;  %v676_v52 = vmov 1.0  }
   0x6   :  { %503 = vmatpush.xpose.msk.msra.mxu0 %vm39_vm0, %v36_v1  ;;  %140 = vmatpush.msra.mxu1 %v35_v2  ;;  %v32_v5 = vld [vmem:[%s961_s1 + $0x50] sm:$0xff]  ;;  %v31_v6 = vld [vmem:[%s961_s1 + $0x48] sm:$0xff]  ;;  %v30_v7 = vld [vmem:[%s961_s1 + $0x40] sm:$0xff]  ;;  %s462_s19 = sshll.u32 %s963_s3, 4  ;;  %s677_s20 = smov [#allocation2]   ;;  %s463_s19 = int_to_ptr.hbm [resolvable:$true] %s462_s19 }
   0x7   :  { %v29_v8 = vld [vmem:[%s961_s1 + $0x38] sm:$0xff]  ;;  %v28_v9 = vld [vmem:[%s961_s1 + $0x30] sm:$0xff]  ;;  %v27_v10 = vld [vmem:[%s961_s1 + $0x28] sm:$0xff]  ;;  %v784_v22 = vand.u32 127, %v20_v21  ;;  %s460_s21 = sshll.u32 %s677_s20, 4  ;;  %s678_s22 = smov [#allocation4]   ;;  %s461_s21 = int_to_ptr.vmem [resolvable:$true] %s460_s21 }
   0x8   :  { %141 = vmatpush.msra.mxu1 %v34_v3  ;;  %v26_v11 = vld [vmem:[%s961_s1 + $0x20] sm:$0xff]  ;;  %v25_v12 = vld [vmem:[%s961_s1 + $0x18] sm:$0xff]  ;;  %v24_v13 = vld [vmem:[%s961_s1 + $0x10] sm:$0xff]  ;;  %s471_s23 = sshll.u32 %s678_s22, 4  ;;  %s473_s26 = sshll.u32 %s964_s4, 4  ;;  %s472_s23 = int_to_ptr.vmem [resolvable:$true] %s471_s23  ;;  %s474_s26 = int_to_ptr.hbm [resolvable:$true] %s473_s26 }
   0x9   :  { %v23_v14 = vld [vmem:[%s961_s1 + $0x8] sm:$0xff]  ;;  %v22_v15 = vld [vmem:[%s961_s1] sm:$0xff]  ;;  %v536_v31 = vld [vmem:[%s961_s1 + $0xf8] sm:$0xff]  ;;  %s679_s3 = smov [#allocation6]   ;;  %s484_s29 = sshll.u32 %s965_s5, 4  ;;  %s485_s29 = int_to_ptr.hbm [resolvable:$true] %s484_s29 }
   0xa   :  { %504 = vmatpush.xpose.msk.msra.mxu0 %vm39_vm0, %v35_v2  ;;  %142 = vmatpush.msra.mxu1 %v33_v4  ;;  %v777_v16 = vld [vmem:[%s960_s0] sm:$0xff]  ;;  %v535_v32 = vld [vmem:[%s961_s1 + $0xf0] sm:$0xff]  ;;  %v534_v33 = vld [vmem:[%s961_s1 + $0xe8] sm:$0xff]  ;;  %s482_s27 = sshll.u32 %s679_s3, 4  ;;  %s483_s27 = int_to_ptr.vmem [resolvable:$true] %s482_s27 }
   0xb   :  { %v597_v17 = vld [vmem:[%s962_s2] ss:$0 sm:$0xff]  ;;  %537 = vmatpush.xpose.msk.msra.mxu2 %vm39_vm0, %v536_v31  ;;  %278 = vmatpush.msra.mxu3 %v536_v31  ;;  %v532_v35 = vld [vmem:[%s961_s1 + $0xd8] sm:$0xff]  ;;  %v531_v36 = vld [vmem:[%s961_s1 + $0xd0] sm:$0xff] }
   0xc   :  { %143 = vmatpush.msra.mxu1 %v32_v5  ;;  %v533_v34 = vld [vmem:[%s961_s1 + $0xe0] sm:$0xff]  ;;  %v530_v37 = vld [vmem:[%s961_s1 + $0xc8] sm:$0xff]  ;;  %v528_v39 = vld [vmem:[%s961_s1 + $0xb8] sm:$0xff] }
   0xd   :  { %279 = vmatpush.msra.mxu3 %v535_v32  ;;  %v529_v38 = vld [vmem:[%s961_s1 + $0xc0] sm:$0xff]  ;;  %v527_v40 = vld [vmem:[%s961_s1 + $0xb0] sm:$0xff]  ;;  %v526_v41 = vld [vmem:[%s961_s1 + $0xa8] sm:$0xff] }
   0xe   :  { %505 = vmatpush.xpose.msk.msra.mxu0 %vm39_vm0, %v34_v3  ;;  %144 = vmatpush.msra.mxu1 %v31_v6  ;;  %v525_v43 = vld [vmem:[%s961_s1 + $0xa0] sm:$0xff]  ;;  %v524_v44 = vld [vmem:[%s961_s1 + $0x98] sm:$0xff]  ;;  %v523_v48 = vld [vmem:[%s961_s1 + $0x90] sm:$0xff] }
   0xf   :  { %538 = vmatpush.xpose.msk.msra.mxu2 %vm39_vm0, %v535_v32  ;;  %280 = vmatpush.msra.mxu3 %v534_v33  ;;  %v522_v50 = vld [vmem:[%s961_s1 + $0x88] sm:$0xff]  ;;  %v521_v53 = vld [vmem:[%s961_s1 + $0x80] sm:$0xff] }
  0x10   :  { %145 = vmatpush.msra.mxu1 %v30_v7  ;;  %v598_v56 = vld [vmem:[%s962_s2 + $0x1] ss:$0 sm:$0xff] }
  0x11   :  { %281 = vmatpush.msra.mxu3 %v533_v34 }
  0x12   :  { %506 = vmatpush.xpose.msk.msra.mxu0 %vm39_vm0, %v33_v4  ;;  %146 = vmatpush.msra.mxu1 %v29_v8  ;;  %v571_v4 = vld [vmem:[%s961_s1 + $0x178] sm:$0xff] }
  0x13   :  { %539 = vmatpush.xpose.msk.msra.mxu2 %vm39_vm0, %v534_v33  ;;  %282 = vmatpush.msra.mxu3 %v532_v35 }
  0x14   :  { %147 = vmatpush.msra.mxu1 %v28_v9 }
  0x15   :  { %283 = vmatpush.msra.mxu3 %v531_v36 }
  0x16   :  { %507 = vmatpush.xpose.msk.msra.mxu0 %vm39_vm0, %v32_v5  ;;  %148 = vmatpush.msra.mxu1 %v27_v10  ;;  %v570_v5 = vld [vmem:[%s961_s1 + $0x170] sm:$0xff] }
  0x17   :  { %540 = vmatpush.xpose.msk.msra.mxu2 %vm39_vm0, %v533_v34  ;;  %284 = vmatpush.msra.mxu3 %v530_v37 }
  0x18   :  { %149 = vmatpush.msra.mxu1 %v26_v11 }
  0x19   :  { %285 = vmatpush.msra.mxu3 %v529_v38 }
  0x1a   :  { %508 = vmatpush.xpose.msk.msra.mxu0 %vm39_vm0, %v31_v6  ;;  %150 = vmatpush.msra.mxu1 %v25_v12  ;;  %v569_v6 = vld [vmem:[%s961_s1 + $0x168] sm:$0xff] }
  0x1b   :  { %541 = vmatpush.xpose.msk.msra.mxu2 %vm39_vm0, %v532_v35  ;;  %286 = vmatpush.msra.mxu3 %v528_v39 }
  0x1c   :  { %151 = vmatpush.msra.mxu1 %v24_v13 }
  0x1d   :  { %287 = vmatpush.msra.mxu3 %v527_v40 }
  0x1e   :  { %509 = vmatpush.xpose.msk.msra.mxu0 %vm39_vm0, %v30_v7  ;;  %152 = vmatpush.msra.mxu1 %v23_v14  ;;  %v568_v7 = vld [vmem:[%s961_s1 + $0x160] sm:$0xff] }
  0x1f   :  { %542 = vmatpush.xpose.msk.msra.mxu2 %vm39_vm0, %v531_v36  ;;  %288 = vmatpush.msra.mxu3 %v526_v41 }
  0x20   :  { %153 = vmatpush.msra.mxu1 %v22_v15 }
  0x21   :  { %289 = vmatpush.msra.mxu3 %v525_v43 }
  0x22   :  { %510 = vmatpush.xpose.msk.msra.mxu0 %vm39_vm0, %v29_v8  ;;  %572 = vmatpush.xpose.msk.msrb.mxu1 %vm39_vm0, %v571_v4  ;;  %v567_v8 = vld [vmem:[%s961_s1 + $0x158] sm:$0xff] }
  0x23   :  { %543 = vmatpush.xpose.msk.msra.mxu2 %vm39_vm0, %v530_v37  ;;  %290 = vmatpush.msra.mxu3 %v524_v44 }
  0x25   :  { %291 = vmatpush.msra.mxu3 %v523_v48 }
  0x26   :  { %511 = vmatpush.xpose.msk.msra.mxu0 %vm39_vm0, %v28_v9  ;;  %573 = vmatpush.xpose.msk.msrb.mxu1 %vm39_vm0, %v570_v5  ;;  %v566_v9 = vld [vmem:[%s961_s1 + $0x150] sm:$0xff] }
  0x27   :  { %544 = vmatpush.xpose.msk.msra.mxu2 %vm39_vm0, %v529_v38  ;;  %292 = vmatpush.msra.mxu3 %v522_v50 }
  0x29   :  { %293 = vmatpush.msra.mxu3 %v521_v53 }
  0x2a   :  { %512 = vmatpush.xpose.msk.msra.mxu0 %vm39_vm0, %v27_v10  ;;  %574 = vmatpush.xpose.msk.msrb.mxu1 %vm39_vm0, %v569_v6  ;;  %v565_v10 = vld [vmem:[%s961_s1 + $0x148] sm:$0xff] }
  0x2b   :  { %545 = vmatpush.xpose.msk.msra.mxu2 %vm39_vm0, %v528_v39  ;;  %418 = vmatpush.msrb.mxu3 %v571_v4 }
  0x2d   :  { %419 = vmatpush.msrb.mxu3 %v570_v5 }
  0x2e   :  { %513 = vmatpush.xpose.msk.msra.mxu0 %vm39_vm0, %v26_v11  ;;  %575 = vmatpush.xpose.msk.msrb.mxu1 %vm39_vm0, %v568_v7  ;;  %v564_v11 = vld [vmem:[%s961_s1 + $0x140] sm:$0xff] }
  0x2f   :  { %546 = vmatpush.xpose.msk.msra.mxu2 %vm39_vm0, %v527_v40  ;;  %420 = vmatpush.msrb.mxu3 %v569_v6 }
  0x31   :  { %421 = vmatpush.msrb.mxu3 %v568_v7 }
  0x32   :  { %514 = vmatpush.xpose.msk.msra.mxu0 %vm39_vm0, %v25_v12  ;;  %v563_v12 = vld [vmem:[%s961_s1 + $0x138] sm:$0xff]  ;;  %576 = vmatpush.xpose.msk.msrb.mxu1 %vm39_vm0, %v567_v8 }
  0x33   :  { %547 = vmatpush.xpose.msk.msra.mxu2 %vm39_vm0, %v526_v41  ;;  %422 = vmatpush.msrb.mxu3 %v567_v8 }
  0x35   :  { %423 = vmatpush.msrb.mxu3 %v566_v9 }
  0x36   :  { %515 = vmatpush.xpose.msk.msra.mxu0 %vm39_vm0, %v24_v13  ;;  %v562_v13 = vld [vmem:[%s961_s1 + $0x130] sm:$0xff]  ;;  %577 = vmatpush.xpose.msk.msrb.mxu1 %vm39_vm0, %v566_v9 }
  0x37   :  { %548 = vmatpush.xpose.msk.msra.mxu2 %vm39_vm0, %v525_v43  ;;  %424 = vmatpush.msrb.mxu3 %v565_v10 }
  0x39   :  { %425 = vmatpush.msrb.mxu3 %v564_v11 }
  0x3a   :  { %516 = vmatpush.xpose.msk.msra.mxu0 %vm39_vm0, %v23_v14  ;;  %v561_v14 = vld [vmem:[%s961_s1 + $0x128] sm:$0xff]  ;;  %578 = vmatpush.xpose.msk.msrb.mxu1 %vm39_vm0, %v565_v10 }
  0x3b   :  { %549 = vmatpush.xpose.msk.msra.mxu2 %vm39_vm0, %v524_v44  ;;  %426 = vmatpush.msrb.mxu3 %v563_v12 }
  0x3d   :  { %427 = vmatpush.msrb.mxu3 %v562_v13 }
  0x3e   :  { %517 = vmatpush.xpose.msk.msra.mxu0 %vm39_vm0, %v22_v15  ;;  %579 = vmatpush.xpose.msk.msrb.mxu1 %vm39_vm0, %v564_v11 }
  0x3f   :  { %550 = vmatpush.xpose.msk.msra.mxu2 %vm39_vm0, %v523_v48  ;;  %428 = vmatpush.msrb.mxu3 %v561_v14 }
  0x41   :  { %518 = vmatmul.msk.f32.vlgmr.msra.gmra.mxu0 %vm39_vm0, %v777_v16 }
  0x42   :  { %580 = vmatpush.xpose.msk.msrb.mxu1 %vm39_vm0, %v563_v12 }
  0x43   :  { %551 = vmatpush.xpose.msk.msra.mxu2 %vm39_vm0, %v522_v50 }
  0x46   :  { %581 = vmatpush.xpose.msk.msrb.mxu1 %vm39_vm0, %v562_v13 }
  0x47   :  { %552 = vmatpush.xpose.msk.msra.mxu2 %vm39_vm0, %v521_v53 }
  0x4a   :  { %582 = vmatpush.xpose.msk.msrb.mxu1 %vm39_vm0, %v561_v14 }
  0xbe   :  { %v108_v18 = vpop.f32.mrf.mxu0 }
  0xbf   :  { %v111_v19 = vmul.f32 2.0, %v108_v18  ;;  %v559_v18 = vld [vmem:[%s961_s1 + $0x118] sm:$0xff] }
  0xc1   :  { %v113_v20 = vsub.f32 %v597_v17, %v111_v19  ;;  %v560_v17 = vld [vmem:[%s961_s1 + $0x120] sm:$0xff] }
  0xc2   :  { %429 = vmatpush.msrb.mxu3 %v560_v17  ;;  %583 = vmatpush.xpose.msk.msrb.mxu1 %vm39_vm0, %v560_v17 }
  0xc3   :  { %114 = vmin.xlane.f32.xlu0 %v113_v20 }
  0xc4   :  { %430 = vmatpush.msrb.mxu3 %v559_v18 }
  0xc6   :  { %584 = vmatpush.xpose.msk.msrb.mxu1 %vm39_vm0, %v559_v18 }
 0x136   :  { %v115_v23 = vpop.xlane.xlu0 %114 }
 0x137   :  { %vm116_vm1 = vcmp.le.f32.partialorder %v113_v20, %v115_v23  ;;  %v558_v23 = vld [vmem:[%s961_s1 + $0x110] sm:$0xff] }
 0x138   :  { %v117_v24 = vsel %vm116_vm1, %v784_v22, 128  ;;  %431 = vmatpush.msrb.mxu3 %v558_v23  ;;  %585 = vmatpush.xpose.msk.msrb.mxu1 %vm39_vm0, %v558_v23 }
 0x139   :  { %v119_v25 = vshra.s32 %v117_v24, 16  ;;  %v118_v27 = vand.u32 65535, %v117_v24 }
 0x13b   :  { %v121_v26 = vcvt.s32.f32 %v119_v25  ;;  %v120_v29 = vcvt.s32.f32 %v118_v27  ;;  %v557_v25 = vld [vmem:[%s961_s1 + $0x108] sm:$0xff]  ;;  %v556_v27 = vld [vmem:[%s961_s1 + $0x100] sm:$0xff] }
 0x13c   :  { %432 = vmatpush.msrb.mxu3 %v557_v25  ;;  %586 = vmatpush.xpose.msk.msrb.mxu1 %vm39_vm0, %v557_v25 }
 0x13d   :  { %122 = vmin.xlane.f32.xlu0 %v121_v26 }
 0x13e   :  { %433 = vmatpush.msrb.mxu3 %v556_v27 }
 0x140   :  { %587 = vmatpush.xpose.msk.msrb.mxu1 %vm39_vm0, %v556_v27 }
 0x1b0   :  { %v123_v28 = vpop.xlane.xlu0 %122 }
 0x1b1   :  { %vm124_vm2 = vcmp.eq.f32.partialorder %v121_v26, %v123_v28  ;;  %v129_v42 = vcvt.f32.s32 %v123_v28 }
 0x1b2   :  { %v125_v30 = vsel %vm124_vm2, %v120_v29, inf }
 0x1b3   :  { %126 = vmin.xlane.f32.xlu1 %v125_v30  ;;  %v130_v46 = vshll.u32 %v129_v42, 16  ;;  %v599_v30 = vld [vmem:[%s962_s2 + $0x2] ss:$0 sm:$0xff] }
 0x226   :  { %v127_v45 = vpop.xlane.xlu1 %126 }
 0x227   :  { %v128_v47 = vcvt.f32.s32 %v127_v45 }
 0x229   :  { %v131_v49 = vadd.s32 %v130_v46, %v128_v47 }
 0x22b   :  { %v132_v51 = vperm.slane %v131_v49, %v784_v22  ;;  %vm135_vm4 = vcmp.eq.s32.totalorder %v784_v22, %v131_v49 }
 0x22c   :  { %520 = vmatmul.msk.f32.vlgmr.msra.gmra.mxu1 %vm135_vm4, %v676_v52 }
 0x22d   :  { %134 = vst.msk [vmem:[#allocation6] sm:$0x1] %vm133_vm3, %v132_v51 }
 0x2a9   :  { %v855_v54 = vpop.f32.mrf.mxu1 }
 0x2aa   :  { %v859_v55 = vsub.f32 %v777_v16, %v855_v54  ;;  %v158_v49 = vsub.f32 %v855_v54, %v777_v16 }
 0x2ac   :  { %553 = vmatmul.msk.f32.vlgmr.msra.gmra.mxu2 %vm39_vm0, %v859_v55 }
 0x32f   :  { %v249_v57 = vpop.f32.mrf.mxu2 }
 0x330   :  { %v252_v58 = vmul.f32 2.0, %v249_v57 }
 0x332   :  { %v254_v59 = vsub.f32 %v598_v56, %v252_v58  ;;  %v159_v56 = vmul.f32 %v158_v49, %v158_v49 }
 0x334   :  { %255 = vmin.xlane.f32.xlu1 %v254_v59 }
 0x3a7   :  { %v256_v60 = vpop.xlane.xlu1 %255 }
 0x3a8   :  { %vm257_vm5 = vcmp.le.f32.partialorder %v254_v59, %v256_v60 }
 0x3a9   :  { %v258_v61 = vsel %vm257_vm5, %v784_v22, 128 }
 0x3aa   :  { %v260_v62 = vshra.s32 %v258_v61, 16  ;;  %v259_v0 = vand.u32 65535, %v258_v61 }
 0x3ac   :  { %v262_v63 = vcvt.s32.f32 %v260_v62  ;;  %v261_v2 = vcvt.s32.f32 %v259_v0 }
 0x3ae   :  { %263 = vmin.xlane.f32.xlu2 %v262_v63 }
 0x421   :  { %v264_v1 = vpop.xlane.xlu2 %263 }
 0x422   :  { %vm265_vm6 = vcmp.eq.f32.partialorder %v262_v63, %v264_v1  ;;  %v270_v15 = vcvt.f32.s32 %v264_v1 }
 0x423   :  { %v266_v3 = vsel %vm265_vm6, %v261_v2, inf }
 0x424   :  { %267 = vmin.xlane.f32.xlu2 %v266_v3  ;;  %v271_v20 = vshll.u32 %v270_v15, 16 }
 0x497   :  { %v268_v19 = vpop.xlane.xlu2 %267 }
 0x498   :  { %v269_v21 = vcvt.f32.s32 %v268_v19 }
 0x49a   :  { %v272_v24 = vadd.s32 %v271_v20, %v269_v21 }
 0x49c   :  { %v273_v26 = vperm.slane %v272_v24, %v784_v22  ;;  %vm275_vm7 = vcmp.eq.s32.totalorder %v784_v22, %v272_v24 }
 0x49d   :  { %555 = vmatmul.msk.f32.vlgmr.msra.gmra.mxu3 %vm275_vm7, %v676_v52 }
 0x49e   :  { %274 = vst.msk [vmem:[#allocation6 + $0x1] sm:$0x1] %vm133_vm3, %v273_v26 }
 0x520   :  { %v295_v28 = vpop.f32.mrf.mxu3 }
 0x521   :  { %v301_v29 = vsub.f32 %v859_v55, %v295_v28  ;;  %v298_v48 = vsub.f32 %v295_v28, %v859_v55  ;;  %v302_v51 = vadd.f32 %v295_v28, %v855_v54 }
 0x523   :  { %588 = vmatmul.msk.f32.vlgmr.msrb.gmra.mxu1 %vm39_vm0, %v301_v29  ;;  %v299_v50 = vmul.f32 %v298_v48, %v298_v48 }
 0x5a0   :  { %v389_v31 = vpop.f32.mrf.mxu1 }
 0x5a1   :  { %v392_v32 = vmul.f32 2.0, %v389_v31 }
 0x5a3   :  { %v394_v33 = vsub.f32 %v599_v30, %v392_v32 }
 0x5a5   :  { %395 = vmin.xlane.f32.xlu0 %v394_v33 }
 0x618   :  { %v396_v34 = vpop.xlane.xlu0 %395 }
 0x619   :  { %vm397_vm8 = vcmp.le.f32.partialorder %v394_v33, %v396_v34 }
 0x61a   :  { %v398_v35 = vsel %vm397_vm8, %v784_v22, 128 }
 0x61b   :  { %v400_v36 = vshra.s32 %v398_v35, 16  ;;  %v399_v38 = vand.u32 65535, %v398_v35 }
 0x61d   :  { %v402_v37 = vcvt.s32.f32 %v400_v36  ;;  %v401_v40 = vcvt.s32.f32 %v399_v38 }
 0x61f   :  { %403 = vmin.xlane.f32.xlu1 %v402_v37 }
 0x692   :  { %v404_v39 = vpop.xlane.xlu1 %403 }
 0x693   :  { %vm405_vm9 = vcmp.eq.f32.partialorder %v402_v37, %v404_v39  ;;  %v410_v42 = vcvt.f32.s32 %v404_v39 }
 0x694   :  { %v406_v41 = vsel %vm405_vm9, %v401_v40, inf }
 0x695   :  { %407 = vmin.xlane.f32.xlu2 %v406_v41  ;;  %v411_v44 = vshll.u32 %v410_v42, 16 }
 0x708   :  { %v408_v43 = vpop.xlane.xlu2 %407 }
 0x709   :  { %v409_v45 = vcvt.f32.s32 %v408_v43 }
 0x70b   :  { %v412_v46 = vadd.s32 %v411_v44, %v409_v45 }
 0x70d   :  { %v413_v47 = vperm.slane %v412_v46, %v784_v22  ;;  %vm415_vm10 = vcmp.eq.s32.totalorder %v784_v22, %v412_v46  ;;  %v300_v22 = vadd.f32 %v299_v50, %v159_v56 }
 0x70e   :  { %590 = vmatmul.msk.f32.vlgmr.msrb.gmra.mxu3 %vm415_vm10, %v676_v52 }
 0x70f   :  { %414 = vst.msk [vmem:[#allocation6 + $0x2] sm:$0x1] %vm133_vm3, %v413_v47 }
 0x791   :  { %v435_v53 = vpop.f32.mrf.mxu3 }
 0x792   :  { %v438_v57 = vsub.f32 %v435_v53, %v301_v29  ;;  %v441_v58 = vadd.f32 %v435_v53, %v302_v51 }
 0x794   :  { %v439_v59 = vmul.f32 %v438_v57, %v438_v57  ;;  %452 = vst.msk [vmem:[#allocation2] sm:$0xff] %vm39_vm0, %v441_v58 }
 0x795   :  { %465 = dma.vmem_to_hbm [thread:$0]  %s461_s21, 128, %s463_s19, [#allocation3]  }
 0x796   :  { %v440_v60 = vadd.f32 %v439_v59, %v300_v22 }
 0x798   :  { %v442_v52 = vsel %vm39_vm0, %v440_v60, 0.0 }
 0x799   :  { %443 = vadd.xlane.f32.xlu0 %v442_v52 }
 0x80c   :  { %v444_v16 = vpop.xlane.xlu0 %443 }
 0x80d   :  { %v445_v54 = vrot.slane %v444_v16, 4 }
 0x80f   :  { %v446_v55 = vadd.f32 %v445_v54, %v444_v16 }
 0x811   :  { %v447_v61 = vrot.slane %v446_v55, 2 }
 0x813   :  { %v448_v62 = vadd.f32 %v447_v61, %v446_v55 }
 0x815   :  { %v449_v63 = vrot.slane %v448_v62, 1 }
 0x817   :  { %v450_v0 = vadd.f32 %v449_v63, %v448_v62 }
 0x819   :  { %591 = vpush %v450_v0 }
 0x84a   :  { %s592_s30 = spop %591 }
 0x84b   :  { %v453_v1 = vstv %s592_s30 }
 0x84c   :  { %454 = vst [vmem:[#allocation4] sm:$0xff] %v453_v1 }
 0x84d   :  { %476 = dma.vmem_to_hbm [thread:$0]  %s472_s23, 128, %s474_s26, [#allocation5]  }
 0x84e   :  { %487 = dma.vmem_to_hbm [thread:$0]  %s483_s27, 64, %s485_s29, [#allocation5]  }
 0x84f   :  { %672 = dma.done.wait [#allocation3], 128  }
 0x850   :  { %673 = vsyncadd [#allocation3], 4294967168 }
 0x851   :  { %674 = dma.done.wait [#allocation5], 192  }
 0x852   :  { %675 = vsyncadd [#allocation5], 4294967104 }
 0x853   :  { %500 = vsyncpa [#allocation3], 1 }
 0x854   :  { %501 = vsyncpa [#allocation5], 1 }

</bundles_post_ra>
